<compile_context>
chip_gen: v5e
topology: v5e:2x2
jax: 0.10.0
libtpu: 0.0.40
codegen_flags: <defaults>
</compile_context>

<pallas_src>
import math

import jax
import jax.numpy as jnp
from jax.experimental import pallas as pl
from jax.experimental.pallas import tpu as pltpu


def _round_up(x, m):
    return ((x + m - 1) // m) * m


def _prep2(a, rows, cols, dtype):
    """Pad a 2-D array to (rows, cols) and cast, skipping no-op pads/casts."""
    if a.shape != (rows, cols):
        a = jnp.pad(a, ((0, rows - a.shape[0]), (0, cols - a.shape[1])))
    if a.dtype != dtype:
        a = a.astype(dtype)
    return a


def _make_sage_cv_kernel(use_agg, hdelta_resident, tk):
    """Build the kernel.

    use_agg         : training mode (fold agg_HBar_dst into the accumulator init)
    hdelta_resident : hdelta arrives as one full (S, F) VMEM-resident block; slice per K
    tk              : K (src) tile size used for in-kernel slicing of resident hdelta
    """

    def _body(anorm_ref, hdelta_ref, hdst_ref, agg_ref,
              w1t_ref, w2t_ref, b_ref, out_ref, acc_ref):
        k = pl.program_id(1)
        nk = pl.num_programs(1)

        if hdelta_resident:
            off = pl.multiple_of(k * tk, tk)
            hblk = hdelta_ref[pl.ds(off, tk), :]
        else:
            hblk = hdelta_ref[...]

        # Mean neighbor aggregation for this (dst tile, src tile).
        part = jnp.dot(anorm_ref[...], hblk, preferred_element_type=jnp.float32)

        # First K step: initialize accumulator (with agg_HBar_dst in training mode);
        # avoids a zero-fill + extra f32 add in the epilogue.
        @pl.when(k == 0)
        def _():
            if use_agg:
                acc_ref[...] = agg_ref[...].astype(jnp.float32) + part
            else:
                acc_ref[...] = part

        @pl.when(k > 0)
        def _():
            acc_ref[...] += part

        # Fused linear + bias + ReLU epilogue, once per dst tile (last K step).
        @pl.when(k == nk - 1)
        def _():
            h = (jnp.dot(hdst_ref[...], w1t_ref[...],
                         preferred_element_type=jnp.float32)
                 + jnp.dot(acc_ref[...].astype(w2t_ref.dtype), w2t_ref[...],
                           preferred_element_type=jnp.float32)
                 + b_ref[...])                       # bias stays f32
            out_ref[...] = jnp.maximum(h, 0.0).astype(out_ref.dtype)

    if use_agg:
        def kernel(anorm_ref, hdelta_ref, hdst_ref, agg_ref,
                   w1t_ref, w2t_ref, b_ref, out_ref, acc_ref):
            _body(anorm_ref, hdelta_ref, hdst_ref, agg_ref,
                  w1t_ref, w2t_ref, b_ref, out_ref, acc_ref)
    else:
        def kernel(anorm_ref, hdelta_ref, hdst_ref,
                   w1t_ref, w2t_ref, b_ref, out_ref, acc_ref):
            _body(anorm_ref, hdelta_ref, hdst_ref, None,
                  w1t_ref, w2t_ref, b_ref, out_ref, acc_ref)

    return kernel


def sage_conv_with_cv(anorm, h_src, h_dst, W, b, hbar_src=None, agg_hbar_dst=None,
                      *, training=True, compute_dtype=jnp.bfloat16, anorm_dtype=None,
                      out_dtype=jnp.float32, tile_m=512, tile_k=512,
                      hdelta_resident=None):
    """Forward pass of SAGEConvWithCV.

    anorm        : [num_dst, num_src] row-normalized adjacency (mean aggregation;
                   zero rows -> 0, matching fn.mean on empty mailboxes)
    h_src        : [num_src, in_feats]
    h_dst        : [num_dst, in_feats]
    W            : [out_feats, 2*in_feats] (PyTorch nn.Linear layout)
    b            : [out_feats]
    hbar_src     : [num_src, in_feats]  (training only)
    agg_hbar_dst : [num_dst, in_feats]  (training only)
    compute_dtype: dtype for MXU operands (bf16 recommended); accumulation is f32.
    anorm_dtype  : optional dtype override for the adjacency (keep f32 if the
                   quantization of the 1/deg weights matters for training).
    hdelta_resident: None = auto (based on VMEM budget); True/False to force.
    """
    num_dst, num_src = anorm.shape
    in_feats = h_src.shape[1]
    out_feats = W.shape[0]

    if training:
        if hbar_src is None or agg_hbar_dst is None:
            raise ValueError("training mode requires hbar_src and agg_hbar_dst")
        # Precompute once in the wrapper (folding the subtraction here halves the
        # src-side HBM traffic versus recomputing it per dst tile).
        hdelta = h_src - hbar_src
        use_agg = True
    else:
        hdelta = h_src
        use_agg = False

    # Split/transpose nn.Linear weight so concat-then-matmul becomes two matmuls summed.
    w1t = W[:, :in_feats].T          # [in_feats, out_feats]  (H_dst half)
    w2t = W[:, in_feats:].T          # [in_feats, out_feats]  (h_neigh half)

    cd = jnp.dtype(compute_dtype)
    adt = jnp.dtype(anorm_dtype) if anorm_dtype is not None else cd
    osz = jnp.dtype(out_dtype).itemsize

    # Native sublane tiling: 8 rows for f32, 16 for bf16, 32 for 8-bit dtypes.
    row_align = {4: 8, 2: 16, 1: 32}.get(min(cd.itemsize, adt.itemsize), 8)

    TM = min(tile_m, _round_up(num_dst, row_align))
    # v7x has 2 TensorCores and the "parallel" dst axis shards across them; make sure
    # there are >= 2 dst tiles when possible so neither core idles.
    if num_dst > row_align and _round_up(num_dst, TM) // TM < 2:
        TM = _round_up((num_dst + 1) // 2, row_align)
    TK = min(tile_k, _round_up(num_src, 128))        # src/K tile (lane axis of anorm)

    D = _round_up(num_dst, TM)
    S = _round_up(num_src, TK)
    F = _round_up(in_feats, 128)                     # lane-dense contraction dim
    O = _round_up(out_feats, 128)                    # lane-dense output dim

    anorm_p = _prep2(anorm, D, S, adt)
    hdelta_p = _prep2(hdelta, S, F, cd)
    hdst_p = _prep2(h_dst, D, F, cd)
    w1t_p = _prep2(w1t, F, O, cd)
    w2t_p = _prep2(w2t, F, O, cd)
    b_p = b.astype(jnp.float32)
    if out_feats != O:
        b_p = jnp.pad(b_p, (0, O - out_feats))
    b_p = b_p.reshape(1, O)

    # ---- VMEM budgeting -------------------------------------------------------------
    try:
        vmem_cap = int(pltpu.get_tpu_info().vmem_capacity_bytes)
    except Exception:
        vmem_cap = 64 * 1024 * 1024    # conservative default (v7x per-TensorCore VMEM)

    base_vmem = (2 * TM * TK * adt.itemsize          # anorm tiles (double-buffered)
                 + 2 * TM * F * cd.itemsize          # H_dst tiles
                 + (2 * TM * F * cd.itemsize if use_agg else 0)   # agg_HBar_dst tiles
                 + 2 * F * O * cd.itemsize           # w1t + w2t (single-buffered)
                 + O * 4                             # bias
                 + 2 * TM * O * osz                  # output tiles (double-buffered)
                 + TM * F * 4)                       # f32 accumulator scratch
    budget = int(vmem_cap * 0.7)
    if hdelta_resident is None:
        hdelta_resident = (base_vmem + S * F * cd.itemsize) <= budget
    hdelta_vmem = S * F * cd.itemsize if hdelta_resident else 2 * TK * F * cd.itemsize
    vmem_limit = int(min(int(vmem_cap * 0.9),
                         max(int((base_vmem + hdelta_vmem) * 1.4), 32 << 20)))

    # ---- Block specs ----------------------------------------------------------------
    resident = pl.Buffered(1)    # fetched once, kept live; no wasted double buffer

    in_specs = [
        pl.BlockSpec((TM, TK), lambda i, k: (i, k)),                  # adjacency tile
        (pl.BlockSpec((S, F), lambda i, k: (0, 0), pipeline_mode=resident)
         if hdelta_resident else
         pl.BlockSpec((TK, F), lambda i, k: (k, 0))),                 # hdelta
        pl.BlockSpec((TM, F), lambda i, k: (i, 0)),                   # H_dst (const over k)
    ]
    operands = [anorm_p, hdelta_p, hdst_p]
    if use_agg:
        operands.append(_prep2(agg_hbar_dst, D, F, cd))
        in_specs.append(pl.BlockSpec((TM, F), lambda i, k: (i, 0)))
    operands += [w1t_p, w2t_p, b_p]
    in_specs += [
        pl.BlockSpec((F, O), lambda i, k: (0, 0), pipeline_mode=resident),
        pl.BlockSpec((F, O), lambda i, k: (0, 0), pipeline_mode=resident),
        pl.BlockSpec((1, O), lambda i, k: (0, 0), pipeline_mode=resident),
    ]

    grid = (D // TM, S // TK)                        # (parallel dst, arbitrary K last)

    # ---- Cost estimate (actual HBM traffic) ------------------------------------------
    flops = 2 * D * S * F + 4 * D * F * O
    hdelta_reads = 1 if hdelta_resident else (D // TM)
    bytes_accessed = int(D * S * adt.itemsize
                         + hdelta_reads * S * F * cd.itemsize
                         + D * F * cd.itemsize * (2 if use_agg else 1)
                         + 2 * F * O * cd.itemsize + O * 4
                         + D * O * osz)

    out = pl.pallas_call(
        _make_sage_cv_kernel(use_agg, hdelta_resident, TK),
        out_shape=jax.ShapeDtypeStruct((D, O), out_dtype),
        grid=grid,
        in_specs=in_specs,
        out_specs=pl.BlockSpec((TM, O), lambda i, k: (i, 0)),
        scratch_shapes=[pltpu.VMEM((TM, F), jnp.float32)],   # f32 aggregation accumulator
        compiler_params=pltpu.CompilerParams(
            dimension_semantics=("parallel", "arbitrary"),
            vmem_limit_bytes=vmem_limit),
        cost_estimate=pl.CostEstimate(
            flops=flops, transcendentals=0, bytes_accessed=bytes_accessed),
    )(*operands)

    return out[:num_dst, :out_feats]


def _reference(anorm, h_src, h_dst, W, b, hbar_src=None, agg_hbar_dst=None, training=True):
    if training:
        hdelta_new = anorm @ (h_src - hbar_src)
        h_neigh = agg_hbar_dst + hdelta_new
    else:
        h_neigh = anorm @ h_src
    h = jnp.concatenate([h_dst, h_neigh], axis=1) @ W.T + b
    return jnp.maximum(h, 0.0)


if __name__ == "__main__":
    key = jax.random.PRNGKey(0)
    num_src, num_dst = 64, 32
    in_feats, out_feats = 32, 32

    k_adj, k_hs, k_hb, k_hd, k_ag, k_w = jax.random.split(key, 6)

    # Deterministic random bipartite block; mean-normalized dense adjacency.
    adj = (jax.random.uniform(k_adj, (num_dst, num_src)) < 0.25).astype(jnp.float32)
    deg = jnp.sum(adj, axis=1, keepdims=True)
    anorm = jnp.where(deg > 0, adj / jnp.maximum(deg, 1.0), 0.0)

    h_src = jax.random.normal(k_hs, (num_src, in_feats), dtype=jnp.float32)
    hbar_src = jax.random.normal(k_hb, (num_src, in_feats), dtype=jnp.float32)
    h_dst = h_src[:num_dst]  # dst nodes are a prefix of src nodes (DGL block convention)
    agg_hbar_dst = jax.random.normal(k_ag, (num_dst, in_feats), dtype=jnp.float32)

    # Parameter init matching reset_parameters(): xavier_uniform(gain=sqrt(2)), bias=0.
    gain = math.sqrt(2.0)  # nn.init.calculate_gain('relu')
    bound = gain * math.sqrt(6.0 / (2 * in_feats + out_feats))
    W = jax.random.uniform(k_w, (out_feats, 2 * in_feats),
                           minval=-bound, maxval=bound, dtype=jnp.float32)
    b = jnp.zeros((out_feats,), dtype=jnp.float32)

    ref = _reference(anorm, h_src, h_dst, W, b, hbar_src, agg_hbar_dst, training=True)

    # Training mode, f32 compute, resident-hdelta path: tight numerical check.
    out_f32 = sage_conv_with_cv(anorm, h_src, h_dst, W, b, hbar_src, agg_hbar_dst,
                                training=True, compute_dtype=jnp.float32)
    out_f32 = jax.block_until_ready(out_f32)
    assert out_f32.shape == (num_dst, out_feats)
    assert jnp.allclose(out_f32, ref, atol=1e-4, rtol=1e-4)

    # Training mode, f32 compute, forced tiled-hdelta fallback path: tight check.
    out_tiled = sage_conv_with_cv(anorm, h_src, h_dst, W, b, hbar_src, agg_hbar_dst,
                                  training=True, compute_dtype=jnp.float32,
                                  hdelta_resident=False)
    out_tiled = jax.block_until_ready(out_tiled)
    assert jnp.allclose(out_tiled, ref, atol=1e-4, rtol=1e-4)

    # Training mode, bf16 compute (performance setting; f32 accumulation): loose check.
    out_bf16 = sage_conv_with_cv(anorm, h_src, h_dst, W, b, hbar_src, agg_hbar_dst,
                                 training=True, compute_dtype=jnp.bfloat16)
    out_bf16 = jax.block_until_ready(out_bf16)
    assert jnp.allclose(out_bf16, ref, atol=1e-1, rtol=5e-2)

    # Eval mode (no history operands at all).
    out_eval = sage_conv_with_cv(anorm, h_src, h_dst, W, b,
                                 training=False, compute_dtype=jnp.float32)
    out_eval = jax.block_until_ready(out_eval)
    ref_eval = _reference(anorm, h_src, h_dst, W, b, training=False)
    assert jnp.allclose(out_eval, ref_eval, atol=1e-4, rtol=1e-4)

    print("KERNEL_OK")
</pallas_src>

<mosaic_0001>
module attributes {stable_mosaic.version = 11 : i64} {
  func.func @kernel(%arg0: i32, %arg1: i32, %arg2: memref<16x128xf32, #tpu.memory_space<vmem>>, %arg3: memref<128x128xf32, #tpu.memory_space<vmem>>, %arg4: memref<16x128xf32, #tpu.memory_space<vmem>>, %arg5: memref<16x128xf32, #tpu.memory_space<vmem>>, %arg6: memref<128x128xf32, #tpu.memory_space<vmem>>, %arg7: memref<128x128xf32, #tpu.memory_space<vmem>>, %arg8: memref<1x128xf32, #tpu.memory_space<vmem>>, %arg9: memref<16x128xf32, #tpu.memory_space<vmem>>, %arg10: memref<16x128xf32, #tpu.memory_space<vmem>>) attributes {dimension_semantics = [#tpu.dimension_semantics<parallel>, #tpu.dimension_semantics<arbitrary>], iteration_bounds = array<i64: 2, 1>, scalar_prefetch = 0 : i64, scratch_operands = 1 : i64, tpu.core_type = #tpu.core_type<tc>, window_params = [{transform_indices = @transform_0, window_bounds = array<i64: 16, 128>}, {pipeline_mode = #tpu.pipeline_mode<synchronous>, transform_indices = @transform_1, window_bounds = array<i64: 128, 128>}, {transform_indices = @transform_2, window_bounds = array<i64: 16, 128>}, {transform_indices = @transform_3, window_bounds = array<i64: 16, 128>}, {pipeline_mode = #tpu.pipeline_mode<synchronous>, transform_indices = @transform_4, window_bounds = array<i64: 128, 128>}, {pipeline_mode = #tpu.pipeline_mode<synchronous>, transform_indices = @transform_5, window_bounds = array<i64: 128, 128>}, {pipeline_mode = #tpu.pipeline_mode<synchronous>, transform_indices = @transform_6, window_bounds = array<i64: 1, 128>}, {transform_indices = @transform_7, window_bounds = array<i64: 16, 128>}]} {
    %c128_i32 = arith.constant 128 : i32
    %0 = arith.muli %arg1, %c128_i32 : i32
    %1 = tpu.assume_multiple %0, 128 : i32
    %2 = arith.index_cast %1 : i32 to index
    %c0 = arith.constant 0 : index
    %3 = vector.load %arg3[%2, %c0] : memref<128x128xf32, #tpu.memory_space<vmem>>, vector<128x128xf32>
    %c0_0 = arith.constant 0 : index
    %c0_1 = arith.constant 0 : index
    %4 = vector.load %arg2[%c0_0, %c0_1] : memref<16x128xf32, #tpu.memory_space<vmem>>, vector<16x128xf32>
    %cst = arith.constant dense<0.000000e+00> : vector<16x128xf32>
    %5 = tpu.matmul %4, %3, %cst {dimension_numbers = #tpu.dot_dimension_numbers<[1], [0], [0], [1], [0, 0, 1, 1], [], []>} : vector<16x128xf32>, vector<128x128xf32>, vector<16x128xf32> -> vector<16x128xf32>
    %c0_i32 = arith.constant 0 : i32
    %6 = arith.cmpi eq, %arg1, %c0_i32 : i32
    %7 = arith.extui %6 : i1 to i32
    %c0_i32_2 = arith.constant 0 : i32
    %8 = arith.cmpi ne, %7, %c0_i32_2 : i32
    scf.if %8 {
      %c0_7 = arith.constant 0 : index
      %c0_8 = arith.constant 0 : index
      %15 = vector.load %arg5[%c0_7, %c0_8] : memref<16x128xf32, #tpu.memory_space<vmem>>, vector<16x128xf32>
      %16 = arith.addf %15, %5 : vector<16x128xf32>
      %c0_9 = arith.constant 0 : index
      %c0_10 = arith.constant 0 : index
      %17 = vector.load %arg10[%c0_9, %c0_10] : memref<16x128xf32, #tpu.memory_space<vmem>>, vector<16x128xf32>
      tpu.vector_store %arg10[%c0_9, %c0_10], %16 {strides = array<i32>} : memref<16x128xf32, #tpu.memory_space<vmem>>, vector<16x128xf32>,
    } else {
    }
    %c0_i32_3 = arith.constant 0 : i32
    %9 = arith.cmpi sgt, %arg1, %c0_i32_3 : i32
    %10 = arith.extui %9 : i1 to i32
    %c0_i32_4 = arith.constant 0 : i32
    %11 = arith.cmpi ne, %10, %c0_i32_4 : i32
    scf.if %11 {
      %c0_7 = arith.constant 0 : index
      %c0_8 = arith.constant 0 : index
      %15 = vector.load %arg10[%c0_7, %c0_8] : memref<16x128xf32, #tpu.memory_space<vmem>>, vector<16x128xf32>
      %16 = arith.addf %15, %5 : vector<16x128xf32>
      %c0_9 = arith.constant 0 : index
      %c0_10 = arith.constant 0 : index
      %17 = vector.load %arg10[%c0_9, %c0_10] : memref<16x128xf32, #tpu.memory_space<vmem>>, vector<16x128xf32>
      tpu.vector_store %arg10[%c0_9, %c0_10], %16 {strides = array<i32>} : memref<16x128xf32, #tpu.memory_space<vmem>>, vector<16x128xf32>,
    } else {
    }
    %c0_i32_5 = arith.constant 0 : i32
    %12 = arith.cmpi eq, %arg1, %c0_i32_5 : i32
    %13 = arith.extui %12 : i1 to i32
    %c0_i32_6 = arith.constant 0 : i32
    %14 = arith.cmpi ne, %13, %c0_i32_6 : i32
    scf.if %14 {
      %c0_7 = arith.constant 0 : index
      %c0_8 = arith.constant 0 : index
      %15 = vector.load %arg4[%c0_7, %c0_8] : memref<16x128xf32, #tpu.memory_space<vmem>>, vector<16x128xf32>
      %c0_9 = arith.constant 0 : index
      %c0_10 = arith.constant 0 : index
      %16 = vector.load %arg6[%c0_9, %c0_10] : memref<128x128xf32, #tpu.memory_space<vmem>>, vector<128x128xf32>
      %cst_11 = arith.constant dense<0.000000e+00> : vector<16x128xf32>
      %17 = tpu.matmul %15, %16, %cst_11 {dimension_numbers = #tpu.dot_dimension_numbers<[1], [0], [0], [1], [0, 0, 1, 1], [], []>} : vector<16x128xf32>, vector<128x128xf32>, vector<16x128xf32> -> vector<16x128xf32>
      %c0_12 = arith.constant 0 : index
      %c0_13 = arith.constant 0 : index
      %18 = vector.load %arg10[%c0_12, %c0_13] : memref<16x128xf32, #tpu.memory_space<vmem>>, vector<16x128xf32>
      %c0_14 = arith.constant 0 : index
      %c0_15 = arith.constant 0 : index
      %19 = vector.load %arg7[%c0_14, %c0_15] : memref<128x128xf32, #tpu.memory_space<vmem>>, vector<128x128xf32>
      %cst_16 = arith.constant dense<0.000000e+00> : vector<16x128xf32>
      %20 = tpu.matmul %18, %19, %cst_16 {dimension_numbers = #tpu.dot_dimension_numbers<[1], [0], [0], [1], [0, 0, 1, 1], [], []>} : vector<16x128xf32>, vector<128x128xf32>, vector<16x128xf32> -> vector<16x128xf32>
      %21 = arith.addf %17, %20 : vector<16x128xf32>
      %c0_17 = arith.constant 0 : index
      %c0_18 = arith.constant 0 : index
      %22 = vector.load %arg8[%c0_17, %c0_18] : memref<1x128xf32, #tpu.memory_space<vmem>>, vector<1x128xf32>
      %23 = vector.broadcast %22 : vector<1x128xf32> to vector<16x128xf32>
      %24 = arith.addf %21, %23 : vector<16x128xf32>
      %cst_19 = arith.constant 0.000000e+00 : f32
      %25 = vector.broadcast %cst_19 : f32 to vector<16x128xf32>
      %26 = arith.maximumf %24, %25 : vector<16x128xf32>
      %c0_20 = arith.constant 0 : index
      %c0_21 = arith.constant 0 : index
      %27 = vector.load %arg9[%c0_20, %c0_21] : memref<16x128xf32, #tpu.memory_space<vmem>>, vector<16x128xf32>
      tpu.vector_store %arg9[%c0_20, %c0_21], %26 {strides = array<i32>} : memref<16x128xf32, #tpu.memory_space<vmem>>, vector<16x128xf32>,
    } else {
    }
    return
  }
  func.func @transform_0(%arg0: i32, %arg1: i32) -> (i32, i32) {
    %c0_i32 = arith.constant 0 : i32
    return %arg0, %arg1 : i32, i32
  }
  func.func @transform_1(%arg0: i32, %arg1: i32) -> (i32, i32) {
    %c0_i32 = arith.constant 0 : i32
    %c0_i32_0 = arith.constant 0 : i32
    %c0_i32_1 = arith.constant 0 : i32
    return %c0_i32, %c0_i32_0 : i32, i32
  }
  func.func @transform_2(%arg0: i32, %arg1: i32) -> (i32, i32) {
    %c0_i32 = arith.constant 0 : i32
    %c0_i32_0 = arith.constant 0 : i32
    return %arg0, %c0_i32 : i32, i32
  }
  func.func @transform_3(%arg0: i32, %arg1: i32) -> (i32, i32) {
    %c0_i32 = arith.constant 0 : i32
    %c0_i32_0 = arith.constant 0 : i32
    return %arg0, %c0_i32 : i32, i32
  }
  func.func @transform_4(%arg0: i32, %arg1: i32) -> (i32, i32) {
    %c0_i32 = arith.constant 0 : i32
    %c0_i32_0 = arith.constant 0 : i32
    %c0_i32_1 = arith.constant 0 : i32
    return %c0_i32, %c0_i32_0 : i32, i32
  }
  func.func @transform_5(%arg0: i32, %arg1: i32) -> (i32, i32) {
    %c0_i32 = arith.constant 0 : i32
    %c0_i32_0 = arith.constant 0 : i32
    %c0_i32_1 = arith.constant 0 : i32
    return %c0_i32, %c0_i32_0 : i32, i32
  }
  func.func @transform_6(%arg0: i32, %arg1: i32) -> (i32, i32) {
    %c0_i32 = arith.constant 0 : i32
    %c0_i32_0 = arith.constant 0 : i32
    %c0_i32_1 = arith.constant 0 : i32
    return %c0_i32, %c0_i32_0 : i32, i32
  }
  func.func @transform_7(%arg0: i32, %arg1: i32) -> (i32, i32) {
    %c0_i32 = arith.constant 0 : i32
    %c0_i32_0 = arith.constant 0 : i32
    return %arg0, %c0_i32 : i32, i32
  }
}

</mosaic_0001>

<bundles_post_ra>
// kernel: tpu_custom_call.1
= control target key start
LH: loop header
LB: loop body
LE: loop exit
PB: predicated region body
PF: predicated region fallthrough
CT: control target
= control target key end

     0   :  { %s1506_s0 = inlined_call_operand.hbm [shape: f32[32,128], index: 0, kind: input, shape index: {}]   ;;  %s1507_s1 = inlined_call_operand.hbm [shape: f32[128,128], index: 1, kind: input, shape index: {}]   ;;  %s1508_s2 = inlined_call_operand.hbm [shape: f32[32,128], index: 2, kind: input, shape index: {}]   ;;  %s1509_s3 = inlined_call_operand.hbm [shape: f32[32,128], index: 3, kind: input, shape index: {}]   ;;  %s1510_s4 = inlined_call_operand.hbm [shape: f32[128,128], index: 4, kind: input, shape index: {}]   ;;  %s1511_s5 = inlined_call_operand.hbm [shape: f32[128,128], index: 5, kind: input, shape index: {}]   ;;  %s1512_s6 = inlined_call_operand.vmem [shape: f32[1,128], index: 6, kind: input, shape index: {}]   ;;  %s1513_s7 = inlined_call_operand.hbm [shape: f32[32,128], index: 7, kind: output, shape index: {}]  }
   0x1   :  { %1523 = sst [smem:[#allocation25_spill]] %s1506_s0 }
   0x2   :  { %1524 = sst [smem:[#allocation26_spill]] %s1507_s1 }
   0x3   :  { %1525 = sst [smem:[#allocation27_spill]] %s1508_s2 }
   0x4   :  { %12 = vsyncpa [#allocation4], 0 }
   0x5   :  { %14 = vsyncpa [#allocation4 + $0x1], 0 }
   0x6   :  { %15 = vsyncpa [#allocation7], 0 }
   0x7   :  { %16 = vsyncpa [#allocation12], 0 }
   0x8   :  { %17 = vsyncpa [#allocation5], 0 }
   0x9   :  { %19 = vsyncpa [#allocation5 + $0x1], 0  ;;  %s1258_s24 = smov 0   ;;  %s1260_s25 = smov 0  }
   0xa   :  { %s1262_s26 = smov 0   ;;  %s1264_s27 = smov 0  }
   0xb   :  { %s1266_s28 = smov 0   ;;  %s1268_s29 = smov 0  }
   0xc LB: > { %1526 = sst [smem:[#allocation20_spill]] %s1197_s26  ;;  %s37_s30 = sadd.s32 1, %s1205_s28  ;;  %s1209_s29 = sphi %s1268_s29, %s25_s29   ;;  %s1205_s28 = sphi %s1266_s28, %s1547_s28   ;;  %s1201_s27 = sphi %s1264_s27, %s1546_s27   ;;  %s1197_s26 = sphi %s1262_s26, %s1545_s26   ;;  %s1193_s25 = sphi %s1260_s25, %s1549_s25   ;;  %s1189_s24 = sphi %s1258_s24, %s1548_s24  }
   0xd   : > { %1527 = sst [smem:[#allocation21_spill]] %s1205_s28  ;;  %s46_s8 = sadd.s32 1, %s1197_s26 }
   0xe   : > { %1528 = sst [smem:[#allocation22_spill]] %s1209_s29  ;;  %p39_p0 = scmp.ge.s32.totalorder %s37_s30, 2 }
   0xf   : > { %p53_p1 = scmp.ne.s32.totalorder %s1197_s26, %s1193_s25  ;;  %p54_p2 = scmp.eq.s32.totalorder %s1209_s29, 0 }
  0x10   : > { %s1551_s30 = smov (%p39_p0, %s37_s30), 0  ;;  %p780_p4 = scmp.ge.s32.totalorder %s1209_s29, 2 }
  0x11   : > { %1529 = sst [smem:[#allocation23_spill]] %s1551_s30  ;;  %p1298_p3 = por %p54_p2, %p53_p1 }
  0x12   : > { %s41_s10 = ssub.s32 %s1205_s28, %s1551_s30  ;;  %p870_p6 = scmp.lt.s32.totalorder %s1209_s29, 2 }
  0x13   : > { %p44_p5 = scmp.eq.s32.totalorder %s41_s10, 0  ;;  %s290_s11 = sand.u32 1, %s1209_s29  }
  0x14   : > { %s292_s12 = sand.u32 1, %s1197_s26   ;;  %s1314_s15 = sshll.u32 %s1205_s28, 4 }
  0x15   : > { %s1309_s13 = scalar_select %p44_p5, %s1197_s26, %s46_s8  }
  0x16   : > { %s1311_s14 = sshll.u32 %s292_s12, 4  ;;  %s1532_s0 = sld [smem:[#allocation25_spill]] }
  0x17   : > { %1531 = sst [smem:[#allocation24_spill]] %s1309_s13  ;;  %s294_s19 = scalar_lea.vmem [#allocation3], %s1311_s14 }
  0x18   : > { %s303_s20 = sshll.u32 %s294_s19, 4  ;;  %p1323_p7 = pnand %p870_p6, %p1298_p3  ;;  %s304_s20 = int_to_ptr.vmem [resolvable:$true] %s303_s20 }
  0x19   : > { %s1327_s23 = scalar_lea.sflag [#allocation4], %s290_s11  ;;  %s1514_s8 = smov 128  }
  0x1a   : > { %s1516_s10 = smov 8   ;;  %s1336_s12 = sadd.s32 4294967295, %s1209_s29  }
  0x1b   : > { %s775_s9 = sadd.s32 4294967294, %s1209_s29   ;;  %p59_p8 = scmp.ne.s32.totalorder %s1193_s25, %s1189_s24 }
  0x1c   : > { %s300_s18 = scalar_lea.hbm %s1532_s0, %s1314_s15  ;;  %p60_p9 = scmp.eq.s32.totalorder %s1336_s12, 0 }
  0x1d   : > { %s301_s21 = sshll.u32 %s300_s18, 4  ;;  %p219_p10 = scmp.eq.s32.totalorder %s1336_s12, 1  ;;  %s302_s21 = int_to_ptr.hbm [resolvable:$true] %s301_s21 }
  0x1e   : > { %856 = dma.hbm_to_vmem [thread:$0]  (!%p1323_p7), %s302_s21, 256, %s304_s20, %s1327_s23, %s1514_s8, %s1514_s8, %s1516_s10  }
  0x1f   : > { %p225_p11 = scmp.eq.s32.totalorder %s775_s9, 1  ;;  %p776_p12 = scmp.ge.s32.totalorder %s1209_s29, 1 }
  0x20   : > { %p1346_p13 = por %p60_p9, %p59_p8  ;;  %p1353_p0 = por %p219_p10, %p53_p1 }
  0x21   : > { %p1357_p2 = por %p225_p11, %p59_p8  ;;  %p232_p3 = scmp.lt.s32.totalorder %s1209_s29, 3 }
  0x22   : > { %s1537_s1 = sld [smem:[#allocation26_spill]]  ;;  %s1213_s9 = smov [#allocation6]  }
  0x23   : > { %p1365_p5 = pnand %p776_p12, %p232_p3  ;;  %s245_s8 = sshll.u32 %s1213_s9, 4  ;;  %s246_s8 = int_to_ptr.vmem [resolvable:$true] %s245_s8 }
  0x24   : > { %s1539_s2 = sld [smem:[#allocation27_spill]]  ;;  %s1541_s9 = smov 8  }
  0x25   : > { %p843_p1 = pneg %p1365_p5  ;;  %s1542_s13 = smov 128  }
  0x26   : > { %s344_s10 = scalar_lea.hbm %s1509_s3, %s1314_s15  ;;  %s339_s26 = scalar_lea.vmem [#allocation9], %s1311_s14 }
  0x27   : > { %p1377_p6 = pnand %p843_p1, %p60_p9  ;;  %s347_s29 = sshll.u32 %s339_s26, 4  ;;  %s348_s29 = int_to_ptr.vmem [resolvable:$true] %s347_s29 }
  0x28   : > { %s243_s20 = sshll.u32 %s1537_s1, 4  ;;  %s317_s1 = scalar_lea.vmem [#allocation8], %s1311_s14  ;;  %s244_s20 = int_to_ptr.hbm [resolvable:$true] %s243_s20 }
  0x29   : > { %s325_s28 = sshll.u32 %s317_s1, 4  ;;  %s363_s18 = sand.u32 (!%p1365_p5), 1, %s1193_s25   ;;  %s326_s28 = int_to_ptr.vmem [resolvable:$true] %s325_s28 }
  0x2a   : > { %s322_s30 = scalar_lea.hbm %s1539_s2, %s1314_s15  ;;  %s1214_s2 = smov [#allocation10]  }
  0x2b   : > { %s323_s19 = sshll.u32 %s322_s30, 4  ;;  %s257_s30 = sshll.u32 %s1510_s4, 4  ;;  %s324_s19 = int_to_ptr.hbm [resolvable:$true] %s323_s19  ;;  %s258_s30 = int_to_ptr.hbm [resolvable:$true] %s257_s30 }
  0x2c   : > { %846 = dma.hbm_to_vmem [thread:$0]  (!%p1377_p6), %s244_s20, 2048, %s246_s8, [#allocation7], %s1542_s13, %s1542_s13, %s1541_s9  }
  0x2d   : > { %859 = dma.hbm_to_vmem [thread:$0]  (!%p1323_p7), %s324_s19, 256, %s326_s28, %s1327_s23, %s1542_s13, %s1542_s13, %s1541_s9  }
  0x2e   : > { %s259_s1 = sshll.u32 %s1214_s2, 4  ;;  %s271_s8 = sshll.u32 %s1511_s5, 4  ;;  %s260_s1 = int_to_ptr.vmem [resolvable:$true] %s259_s1  ;;  %s272_s8 = int_to_ptr.hbm [resolvable:$true] %s271_s8 }
  0x2f   : > { %849 = dma.hbm_to_vmem [thread:$0]  (!%p1377_p6), %s258_s30, 2048, %s260_s1, [#allocation7], %s1542_s13, %s1542_s13, %s1541_s9  }
  0x30   : > { %s1215_s28 = smov [#allocation11]   ;;  %s345_s2 = sshll.u32 %s344_s10, 4  ;;  %s346_s2 = int_to_ptr.hbm [resolvable:$true] %s345_s2 }
  0x31   : > { %s273_s20 = sshll.u32 %s1215_s28, 4  ;;  %359 = sbr.rel (%p1365_p5) target bundleno = 367 (0x16f), region = 48  ;;  %s274_s20 = int_to_ptr.vmem [resolvable:$true] %s273_s20 }
  0x32   : > { %852 = dma.hbm_to_vmem [thread:$0]  (!%p1377_p6), %s272_s8, 2048, %s274_s20, [#allocation12], %s1542_s13, %s1542_s13, %s1541_s9  }
  0x33   : > { %862 = dma.hbm_to_vmem [thread:$0]  (!%p1323_p7), %s346_s2, 256, %s348_s29, %s1327_s23, %s1542_s13, %s1542_s13, %s1541_s9  }
  0x34   : > { %s361_s15 = sand.u32 (!%p1365_p5), 1, %s1336_s12   ;;  %s1426_s30 = sshll.u32 (!%p1365_p5), %s363_s18, 4 }
  0x35   : > { %s362_s14 = scalar_lea.sflag (!%p1365_p5), [#allocation4], %s361_s15  ;;  %s365_s1 = scalar_lea.vmem (!%p1365_p5), [#allocation3], %s1426_s30 }
  0x36   : > { %1164 = dma.done.wait (%p1346_p13), %s362_s14, 256  }
  0x37   : > { %1166 = vsyncadd (%p1346_p13), %s362_s14, 4294967040 }
  0x38   : > { %1168 = dma.done.wait (%p60_p9), [#allocation7], 2048  }
  0x39   : > { %1170 = vsyncadd (%p60_p9), [#allocation7], 4294965248  ;;  %s380_s13 = scalar_lea.vmem [#allocation8], %s1426_s30 }
  0x3a   : > { %1172 = dma.done.wait (%p1346_p13), %s362_s14, 512  }
  0x3b   : > { %1174 = vsyncadd (%p1346_p13), %s362_s14, 4294966784  ;;  %s390_s22 = scalar_lea.vmem [#allocation9], %s1426_s30 }
  0x3c   : > { %1176 = dma.done.wait (%p60_p9), [#allocation7], 2048  }
  0x3d   : > { %1178 = vsyncadd (%p60_p9), [#allocation7], 4294965248 }
  0x3e   : > { %1180 = dma.done.wait (%p60_p9), [#allocation12], 2048  }
  0x3f   : > { %1182 = vsyncadd (%p60_p9), [#allocation12], 4294965248  ;;  %v463_v0 = vld [vmem:[#allocation6 + $0x78] sm:$0xff]  ;;  %v462_v1 = vld [vmem:[#allocation6 + $0x70] sm:$0xff]  ;;  %s806_s11 = sshll.u32 %s1201_s27, 4  ;;  %s441_s28 = scalar_lea.vmem [#allocation13], %s1426_s30 }
  0x40   : > { %466 = vmatpush.msra.mxu0 %v463_v0  ;;  %807 = vmatpush.msra.mxu3 %v463_v0  ;;  %v461_v2 = vld [vmem:[#allocation6 + $0x68] sm:$0xff]  ;;  %v460_v3 = vld [vmem:[#allocation6 + $0x60] sm:$0xff]  ;;  %v459_v4 = vld [vmem:[#allocation6 + $0x58] sm:$0xff]  ;;  %s616_s8 = scalar_lea.hbm %s1513_s7, %s806_s11  ;;  %s617_s20 = sshll.u32 %s441_s28, 4  ;;  %s618_s20 = int_to_ptr.vmem [resolvable:$true] %s617_s20 }
  0x41   : > { %v529_v5 = vld [vmem:[#allocation10 + $0x78] sm:$0xff]  ;;  %v528_v6 = vld [vmem:[#allocation10 + $0x70] sm:$0xff]  ;;  %v527_v10 = vld [vmem:[#allocation10 + $0x68] sm:$0xff]  ;;  %s619_s19 = sshll.u32 %s616_s8, 4  ;;  %s605_s27 = scalar_lea.sflag [#allocation5], %s363_s18  ;;  %s620_s19 = int_to_ptr.hbm [resolvable:$true] %s619_s19 }
  0x42   : > { %467 = vmatpush.msra.mxu0 %v462_v1  ;;  %808 = vmatpush.msra.mxu3 %v462_v1  ;;  %v547_v7 = vld [vmem:[#allocation11 + $0x78] sm:$0xff]  ;;  %v546_v8 = vld [vmem:[#allocation11 + $0x70] sm:$0xff]  ;;  %v545_v11 = vld [vmem:[#allocation11 + $0x68] sm:$0xff]  ;;  %s1125_s0 = sshra.s32 %s620_s19, 4  ;;  %s1131_s29 = scalar_lea.hbm %s1513_s7, 32  ;;  %s1126_s0 = int_to_ptr.hbm [resolvable:$true] %s1125_s0 }
  0x43   : > { %v458_v9 = vld [vmem:[#allocation6 + $0x50] sm:$0xff]  ;;  %571 = vmatpush.msra.mxu2 %v529_v5  ;;  %548 = vmatpush.msra.mxu1 %v547_v7  ;;  %v457_v12 = vld [vmem:[#allocation6 + $0x48] sm:$0xff]  ;;  %v526_v13 = vld [vmem:[#allocation10 + $0x60] sm:$0xff]  ;;  %s1127_s10 = scalar_lea.hbm %s1126_s0, 16  ;;  %p1132_p10 = scmp.lt.s32.totalorder %s1126_s0, %s1513_s7 }
  0x44   : > { %468 = vmatpush.msra.mxu0 %v461_v2  ;;  %809 = vmatpush.msra.mxu3 %v461_v2  ;;  %v544_v14 = vld [vmem:[#allocation11 + $0x60] sm:$0xff]  ;;  %v525_v16 = vld [vmem:[#allocation10 + $0x58] sm:$0xff]  ;;  %v524_v19 = vld [vmem:[#allocation10 + $0x50] sm:$0xff]  ;;  %p1128_p7 = scmp.ne.s32.totalorder %s1126_s0, %s1127_s10  ;;  %p1133_p11 = scmp.lt.s32.totalorder %s1131_s29, %s1127_s10 }
  0x45   : > { %572 = vmatpush.msra.mxu2 %v528_v6  ;;  %549 = vmatpush.msra.mxu1 %v546_v8  ;;  %v456_v15 = vld [vmem:[#allocation6 + $0x40] sm:$0xff]  ;;  %v543_v17 = vld [vmem:[#allocation11 + $0x58] sm:$0xff]  ;;  %v542_v20 = vld [vmem:[#allocation11 + $0x50] sm:$0xff] }
  0x46   : > { %469 = vmatpush.msra.mxu0 %v460_v3  ;;  %810 = vmatpush.msra.mxu3 %v460_v3  ;;  %v455_v18 = vld [vmem:[#allocation6 + $0x38] sm:$0xff]  ;;  %v454_v21 = vld [vmem:[#allocation6 + $0x30] sm:$0xff]  ;;  %v523_v22 = vld [vmem:[#allocation10 + $0x48] sm:$0xff]  ;;  %p1129_p8 = pnand %p1128_p7, %p1353_p0  ;;  %p1134_p12 = por %p1133_p11, %p1132_p10 }
  0x47   : > { %573 = vmatpush.msra.mxu2 %v527_v10  ;;  %550 = vmatpush.msra.mxu1 %v545_v11  ;;  %v541_v23 = vld [vmem:[#allocation11 + $0x48] sm:$0xff]  ;;  %v522_v25 = vld [vmem:[#allocation10 + $0x40] sm:$0xff]  ;;  %v521_v28 = vld [vmem:[#allocation10 + $0x38] sm:$0xff] }
  0x48   : > { %470 = vmatpush.msra.mxu0 %v459_v4  ;;  %811 = vmatpush.msra.mxu3 %v459_v4  ;;  %v453_v24 = vld [vmem:[#allocation6 + $0x28] sm:$0xff]  ;;  %v540_v26 = vld [vmem:[#allocation11 + $0x40] sm:$0xff]  ;;  %v539_v29 = vld [vmem:[#allocation11 + $0x38] sm:$0xff]  ;;  %p1130_p9 = pneg %p1129_p8 }
  0x49   : > { %574 = vmatpush.msra.mxu2 %v526_v13  ;;  %551 = vmatpush.msra.mxu1 %v544_v14  ;;  %v452_v27 = vld [vmem:[#allocation6 + $0x20] sm:$0xff]  ;;  %v451_v30 = vld [vmem:[#allocation6 + $0x18] sm:$0xff]  ;;  %v520_v31 = vld [vmem:[#allocation10 + $0x30] sm:$0xff] }
  0x4a   : > { %471 = vmatpush.msra.mxu0 %v458_v9  ;;  %812 = vmatpush.msra.mxu3 %v458_v9  ;;  %v538_v32 = vld [vmem:[#allocation11 + $0x30] sm:$0xff]  ;;  %v519_v34 = vld [vmem:[#allocation10 + $0x28] sm:$0xff]  ;;  %v518_v37 = vld [vmem:[#allocation10 + $0x20] sm:$0xff]  ;;  %p1135_p13 = pnand %p1134_p12, %p1130_p9 }
  0x4b   : > { %575 = vmatpush.msra.mxu2 %v525_v16  ;;  %552 = vmatpush.msra.mxu1 %v543_v17  ;;  %v450_v33 = vld [vmem:[#allocation6 + $0x10] sm:$0xff]  ;;  %v537_v35 = vld [vmem:[#allocation11 + $0x28] sm:$0xff]  ;;  %v536_v38 = vld [vmem:[#allocation11 + $0x20] sm:$0xff] }
  0x4c   : > { %472 = vmatpush.msra.mxu0 %v457_v12  ;;  %813 = vmatpush.msra.mxu3 %v457_v12  ;;  %v449_v36 = vld [vmem:[#allocation6 + $0x8] sm:$0xff]  ;;  %v448_v39 = vld [vmem:[#allocation6] sm:$0xff]  ;;  %v517_v42 = vld [vmem:[#allocation10 + $0x18] sm:$0xff] }
  0x4d   : > { %576 = vmatpush.msra.mxu2 %v524_v19  ;;  %553 = vmatpush.msra.mxu1 %v542_v20  ;;  %v464_v40 = vld [vmem:[%s365_s1] sm:$0xff]  ;;  %v465_v41 = vld [vmem:[%s365_s1 + $0x8] sm:$0xff] }
  0x4e   : > { %473 = vmatpush.msra.mxu0 %v456_v15  ;;  %814 = vmatpush.msra.mxu3 %v456_v15  ;;  %v535_v43 = vld [vmem:[#allocation11 + $0x18] sm:$0xff]  ;;  %v516_v44 = vld [vmem:[#allocation10 + $0x10] sm:$0xff]  ;;  %v515_v46 = vld [vmem:[#allocation10 + $0x8] sm:$0xff] }
  0x4f   : > { %577 = vmatpush.msra.mxu2 %v523_v22  ;;  %554 = vmatpush.msra.mxu1 %v541_v23  ;;  %v534_v45 = vld [vmem:[#allocation11 + $0x10] sm:$0xff]  ;;  %v514_v47 = vld [vmem:[#allocation10] sm:$0xff]  ;;  %v533_v49 = vld [vmem:[#allocation11 + $0x8] sm:$0xff] }
  0x50   : > { %474 = vmatpush.msra.mxu0 %v455_v18  ;;  %815 = vmatpush.msra.mxu3 %v455_v18  ;;  %v512_v48 = vld [vmem:[%s380_s13] sm:$0xff]  ;;  %v513_v51 = vld [vmem:[%s380_s13 + $0x8] sm:$0xff] }
  0x51   : > { %578 = vmatpush.msra.mxu2 %v522_v25  ;;  %555 = vmatpush.msra.mxu1 %v540_v26  ;;  %v532_v50 = vld [vmem:[#allocation11] sm:$0xff]  ;;  %v494_v55 = vld [vmem:[%s390_s22 + $0x8] sm:$0xff] }
  0x52   : > { %475 = vmatpush.msra.mxu0 %v454_v21  ;;  %816 = vmatpush.msra.mxu3 %v454_v21  ;;  %v493_v52 = vld [vmem:[%s390_s22] sm:$0xff] }
  0x53   : > { %579 = vmatpush.msra.mxu2 %v521_v28  ;;  %556 = vmatpush.msra.mxu1 %v539_v29  ;;  %v930_v59 = vld [vmem:[%s1512_s6] ss:$0 sm:$0xff] }
  0x54   : > { %476 = vmatpush.msra.mxu0 %v453_v24  ;;  %817 = vmatpush.msra.mxu3 %v453_v24 }
  0x55   : > { %580 = vmatpush.msra.mxu2 %v520_v31  ;;  %557 = vmatpush.msra.mxu1 %v538_v32 }
  0x56   : > { %477 = vmatpush.msra.mxu0 %v452_v27  ;;  %818 = vmatpush.msra.mxu3 %v452_v27 }
  0x57   : > { %581 = vmatpush.msra.mxu2 %v519_v34  ;;  %558 = vmatpush.msra.mxu1 %v537_v35 }
  0x58   : > { %478 = vmatpush.msra.mxu0 %v451_v30  ;;  %819 = vmatpush.msra.mxu3 %v451_v30 }
  0x59   : > { %582 = vmatpush.msra.mxu2 %v518_v37  ;;  %559 = vmatpush.msra.mxu1 %v536_v38 }
  0x5a   : > { %479 = vmatpush.msra.mxu0 %v450_v33  ;;  %820 = vmatpush.msra.mxu3 %v450_v33 }
  0x5b   : > { %583 = vmatpush.msra.mxu2 %v517_v42  ;;  %560 = vmatpush.msra.mxu1 %v535_v43 }
  0x5c   : > { %480 = vmatpush.msra.mxu0 %v449_v36  ;;  %821 = vmatpush.msra.mxu3 %v449_v36 }
  0x5d   : > { %584 = vmatpush.msra.mxu2 %v516_v44  ;;  %561 = vmatpush.msra.mxu1 %v534_v45 }
  0x5e   : > { %481 = vmatpush.msra.mxu0 %v448_v39  ;;  %822 = vmatpush.msra.mxu3 %v448_v39 }
  0x5f   : > { %482 = vmatmul.f32.vlgmr.msra.gmra.mxu0 %v464_v40  ;;  %485 = vmatmul.f32.vlgmr.msra.gmra.mxu3 %v465_v41 }
  0x60   : > { %585 = vmatpush.msra.mxu2 %v515_v46  ;;  %562 = vmatpush.msra.mxu1 %v533_v49 }
  0x62   : > { %586 = vmatpush.msra.mxu2 %v514_v47  ;;  %563 = vmatpush.msra.mxu1 %v532_v50 }
  0x63   : > { %587 = vmatmul.f32.vlgmr.msra.gmra.mxu2 %v512_v48 }
  0x6b   : > { %590 = vmatmul.f32.gmra.mxu2 %v513_v51 }
  0xdc   : > { %v483_v53 = vpop.f32.mrf.mxu0 }
  0xdd   : > { %v495_v54 = vadd.f32 %v493_v52, %v483_v53 }
  0xdf   : > { %564 = vmatmul.f32.vlgmr.msra.gmra.mxu1 %v495_v54 }
  0xe2   : > { %v486_v56 = vpop.f32.mrf.mxu3 }
  0xe3   : > { %v496_v57 = vadd.f32 %v494_v55, %v486_v56 }
  0xe6   : > { %v588_v58 = vpop.f32.mrf.mxu2 }
  0xe7   : > { %567 = vmatmul.f32.gmra.mxu1 %v496_v57 }
  0xee   : > { %v591_v0 = vpop.f32.mrf.mxu2 }
 0x15c   : > { %v565_v60 = vpop.f32.mrf.mxu1 }
 0x15d   : > { %v589_v61 = vadd.f32 %v588_v58, %v565_v60 }
 0x15f   : > { %v598_v62 = vadd.f32 %v930_v59, %v589_v61 }
 0x161   : > { %v600_v63 = vmax.f32 %v598_v62, 0.0 }
 0x163   : > { %602 = vst [vmem:[%s441_s28] sm:$0xff] %v600_v63 }
 0x164   : > { %v568_v1 = vpop.f32.mrf.mxu1 }
 0x165   : > { %v592_v2 = vadd.f32 %v591_v0, %v568_v1 }
 0x167   : > { %v599_v3 = vadd.f32 %v930_v59, %v592_v2 }
 0x169   : > { %v601_v4 = vmax.f32 %v599_v3, 0.0 }
 0x16b   : > { %603 = vst [vmem:[%s441_s28 + $0x8] sm:$0xff] %v601_v4 }
 0x16c   : > { %1138 = shalt.err (!%p1135_p13)
}
 0x16d   : > { %s1216_s18 = smov 128   ;;  %s1217_s14 = smov 8  }
 0x16e   : > { %841 = dma.vmem_to_hbm [thread:$0]  (%p1353_p0), %s618_s20, 256, %s620_s19, %s605_s27, %s1216_s18, %s1216_s18, %s1217_s14  }
 0x16f PF: > { %s1543_s1 = sld [smem:[#allocation22_spill]]  ;;  %s634_s13 = sand.u32 1, %s1189_s24  }
 0x170   : > { %p864_p3 = pnand %p780_p4, %p1357_p2  ;;  %s635_s22 = scalar_lea.sflag [#allocation5], %s634_s13 }
 0x172   : > { %p865_p5 = pneg %p864_p3 }
 0x174   : > { %1184 = dma.done.wait (%p865_p5), %s635_s22, 256  }
 0x175   : > { %1186 = vsyncadd (%p865_p5), %s635_s22, 4294967040  ;;  %s25_s29 = sadd.s32 1, %s1543_s1   ;;  %s1544_s23 = sld [smem:[#allocation20_spill]] }
 0x176   : > { %p22_p1 = scmp.ge.s32.totalorder %s25_s29, 4   ;;  %s1545_s26 = sld [smem:[#allocation24_spill]] }
 0x177   : > { %s1546_s27 = sld [smem:[#allocation21_spill]]  ;;  %s1548_s24 = smov %s1193_s25 }
 0x178   : > { %s1547_s28 = sld [smem:[#allocation23_spill]]  ;;  %24 = sbr.rel (!%p22_p1) target bundleno = 12 (0xc), region = 140 }
 0x17b   : > { %s1549_s25 = smov %s1544_s23 }
 0x17d   :  { %641 = vsyncpa [#allocation4], 1 }
 0x17e   :  { %643 = vsyncpa [#allocation4 + $0x1], 1 }
 0x17f   :  { %644 = vsyncpa [#allocation7], 1 }
 0x180   :  { %645 = vsyncpa [#allocation12], 1 }
 0x181   :  { %646 = vsyncpa [#allocation5], 1 }
 0x182   :  { %648 = vsyncpa [#allocation5 + $0x1], 1 }

</bundles_post_ra>
